<compile_context>
chip_gen: v6e
topology: v6e:2x2x1
jax: 0.10.0
libtpu: 0.0.40
codegen_flags: <defaults>
</compile_context>

<pallas_src>
import functools
import math

import jax
import jax.numpy as jnp
from jax.experimental import pallas as pl
from jax.experimental.pallas import tpu as pltpu


_INV_SQRT2 = 0.7071067811865476


def _round_up(n, m):
    return ((n + m - 1) // m) * m


def _pad2d(a, rows, cols):
    r, c = a.shape
    if r == rows and c == cols:
        return a
    return jnp.pad(a, ((0, rows - r), (0, cols - c)))


def ffn_kernel(x_ref, w1_ref, b1_ref, w2_ref, b2_ref, gamma_ref, beta_ref,
               o_ref, *, inv_d):
    x = x_ref[...]                                            # (TILE_N, Dp), native dtype

    # linear_1 + erf GELU (matches torch: h * 0.5 * (1 + erf(h / sqrt(2))))
    h = jnp.dot(x, w1_ref[...], preferred_element_type=jnp.float32)
    h = h + b1_ref[...].astype(jnp.float32)
    h = h * 0.5 * (1.0 + jax.lax.erf(h * jnp.float32(_INV_SQRT2)))

    # linear_2. Dropout(p=0.5) is identity in eval mode.
    # TODO(synk): training-mode dropout (pltpu.prng_seed + prng_random_bits) not implemented.
    y = jnp.dot(h.astype(w2_ref.dtype), w2_ref[...],
                preferred_element_type=jnp.float32)
    y = y + b2_ref[...].astype(jnp.float32)

    # Residual + LayerNorm over the *true* D.  Padded feature columns of both
    # x and y are zero, so summing over the padded width and scaling by
    # 1/true_D is exact; padded gamma/beta columns are zero so the padded
    # output columns are zero as well.
    z = y + x.astype(jnp.float32)
    inv_d = jnp.float32(inv_d)
    mean = jnp.sum(z, axis=-1, keepdims=True) * inv_d
    mean_sq = jnp.sum(z * z, axis=-1, keepdims=True) * inv_d
    var = jnp.maximum(mean_sq - mean * mean, 0.0)
    zn = (z - mean) * jax.lax.rsqrt(var + jnp.float32(1e-12))
    out = gamma_ref[...].astype(jnp.float32) * zn + beta_ref[...].astype(jnp.float32)
    o_ref[...] = out.astype(o_ref.dtype)


def _pick_tile_n(n):
    # Larger tiles amortize the ~0.35 us per-grid-step overhead; right-size
    # for the chip's VMEM (v7x: 64 MiB physical vs 128 MiB on v5e/v6e).
    try:
        vmem = pltpu.get_tpu_info().vmem_capacity_bytes
    except Exception:
        vmem = 64 << 20
    base = 1024 if vmem >= (100 << 20) else 512
    return min(base, _round_up(n, 8))


def ffn_forward(x, w1, b1, w2, b2, gamma, beta, *, tile_n=None):
    """FFN forward.

    x: (B, S, D).  w1: (D, 4D), b1: (1, 4D), w2: (4D, D), b2/gamma/beta: (1, D).
    Weights are pre-transposed to (in, out) so the kernel computes plain x @ W.
    """
    B, S, D = x.shape
    H = w1.shape[1]
    N = B * S

    # Pad feature dims to multiples of 128 (lane-dense loads/stores, full MXU lanes).
    Dp = _round_up(D, 128)
    Hp = _round_up(H, 128)

    tile_n = tile_n or _pick_tile_n(N)
    Np = _round_up(N, tile_n)

    x2d = _pad2d(x.reshape(N, D), Np, Dp)
    w1p = _pad2d(w1, Dp, Hp)
    b1p = _pad2d(b1, 1, Hp)
    w2p = _pad2d(w2, Hp, Dp)
    b2p = _pad2d(b2, 1, Dp)
    gp = _pad2d(gamma, 1, Dp)
    bp = _pad2d(beta, 1, Dp)

    grid = (Np // tile_n,)

    itemsize = jnp.dtype(x.dtype).itemsize
    vmem_bytes = (
        2 * 2 * tile_n * Dp * itemsize                    # x + out tiles, double-buffered
        + 2 * (Dp * Hp + Hp * Dp + 6 * Hp) * itemsize     # resident params (conservative 2x)
        + 2 * tile_n * Hp * 4                             # f32 GELU intermediate + headroom
        + (8 << 20)                                       # compiler scratch slack
    )
    vmem_bytes = int(max(32 << 20, vmem_bytes))

    # Advisory cost estimate (helps XLA schedule around the custom call).
    flops = 2 * Np * Dp * Hp * 2 + 10 * Np * Dp           # two matmuls + LN/residual epsilon
    cost = pl.CostEstimate(
        flops=int(flops),
        transcendentals=int(Np * Hp),                     # erf
        bytes_accessed=int((2 * Np * Dp + Dp * Hp + Hp * Dp + 6 * Hp) * itemsize),
    )

    def resident(shape):
        return pl.BlockSpec(shape, lambda i: (0, 0))

    out2d = pl.pallas_call(
        functools.partial(ffn_kernel, inv_d=1.0 / D),
        out_shape=jax.ShapeDtypeStruct((Np, Dp), x.dtype),
        grid_spec=pltpu.PrefetchScalarGridSpec(
            num_scalar_prefetch=0,
            grid=grid,
            in_specs=[
                pl.BlockSpec((tile_n, Dp), lambda i: (i, 0)),   # x (streamed row tiles)
                resident((Dp, Hp)),                             # w1
                resident((1, Hp)),                              # b1
                resident((Hp, Dp)),                             # w2
                resident((1, Dp)),                              # b2
                resident((1, Dp)),                              # gamma
                resident((1, Dp)),                              # beta
            ],
            out_specs=pl.BlockSpec((tile_n, Dp), lambda i: (i, 0)),
        ),
        compiler_params=pltpu.CompilerParams(
            dimension_semantics=("parallel",),
            vmem_limit_bytes=vmem_bytes,
        ),
        cost_estimate=cost,
    )(x2d, w1p, b1p, w2p, b2p, gp, bp)

    return out2d[:N, :D].reshape(B, S, D)


def _reference(x, w1, b1, w2, b2, gamma, beta):
    h = jnp.dot(x, w1) + b1
    h = h * 0.5 * (1.0 + jax.lax.erf(h / jnp.sqrt(2.0)))
    y = jnp.dot(h, w2) + b2
    z = y + x
    u = jnp.mean(z, axis=-1, keepdims=True)
    s = jnp.mean((z - u) ** 2, axis=-1, keepdims=True)
    zn = (z - u) / jnp.sqrt(s + 1e-12)
    return gamma * zn + beta


if __name__ == "__main__":
    B, S, D = 2, 8, 64          # batch=2, seq=8, d_model=64 -> hidden = 256
    H = 4 * D

    key = jax.random.PRNGKey(0)
    kx, k1, kb1, k2, kb2 = jax.random.split(key, 5)

    x = jax.random.normal(kx, (B, S, D), dtype=jnp.float32)

    # Deterministic parameter init (Kaiming-uniform-ish bounds like nn.Linear).
    lim1 = 1.0 / math.sqrt(D)
    lim2 = 1.0 / math.sqrt(H)
    w1 = jax.random.uniform(k1, (D, H), minval=-lim1, maxval=lim1, dtype=jnp.float32)
    b1 = jax.random.uniform(kb1, (1, H), minval=-lim1, maxval=lim1, dtype=jnp.float32)
    w2 = jax.random.uniform(k2, (H, D), minval=-lim2, maxval=lim2, dtype=jnp.float32)
    b2 = jax.random.uniform(kb2, (1, D), minval=-lim2, maxval=lim2, dtype=jnp.float32)
    gamma = jnp.ones((1, D), dtype=jnp.float32)
    beta = jnp.zeros((1, D), dtype=jnp.float32)

    out = ffn_forward(x, w1, b1, w2, b2, gamma, beta)
    out = jax.block_until_ready(out)

    ref = _reference(x, w1, b1, w2, b2, gamma, beta)
    assert out.shape == (B, S, D)
    # One-pass moments vs two-pass reference: tiny f32 differences are possible.
    assert jnp.allclose(out, ref, atol=1e-4, rtol=1e-4), "mismatch vs reference"

    print("KERNEL_OK")
</pallas_src>

<mosaic_0001>
module attributes {stable_mosaic.version = 11 : i64} {
  func.func @ffn_kernel(%arg0: i32, %arg1: memref<16x128xf32, #tpu.memory_space<vmem>>, %arg2: memref<128x256xf32, #tpu.memory_space<vmem>>, %arg3: memref<1x256xf32, #tpu.memory_space<vmem>>, %arg4: memref<256x128xf32, #tpu.memory_space<vmem>>, %arg5: memref<1x128xf32, #tpu.memory_space<vmem>>, %arg6: memref<1x128xf32, #tpu.memory_space<vmem>>, %arg7: memref<1x128xf32, #tpu.memory_space<vmem>>, %arg8: memref<16x128xf32, #tpu.memory_space<vmem>>) attributes {dimension_semantics = [#tpu.dimension_semantics<parallel>], iteration_bounds = array<i64: 1>, scalar_prefetch = 0 : i64, scratch_operands = 0 : i64, tpu.core_type = #tpu.core_type<tc>, window_params = [{transform_indices = @transform_0, window_bounds = array<i64: 16, 128>}, {pipeline_mode = #tpu.pipeline_mode<synchronous>, transform_indices = @transform_1, window_bounds = array<i64: 128, 256>}, {pipeline_mode = #tpu.pipeline_mode<synchronous>, transform_indices = @transform_2, window_bounds = array<i64: 1, 256>}, {pipeline_mode = #tpu.pipeline_mode<synchronous>, transform_indices = @transform_3, window_bounds = array<i64: 256, 128>}, {pipeline_mode = #tpu.pipeline_mode<synchronous>, transform_indices = @transform_4, window_bounds = array<i64: 1, 128>}, {pipeline_mode = #tpu.pipeline_mode<synchronous>, transform_indices = @transform_5, window_bounds = array<i64: 1, 128>}, {pipeline_mode = #tpu.pipeline_mode<synchronous>, transform_indices = @transform_6, window_bounds = array<i64: 1, 128>}, {transform_indices = @transform_7, window_bounds = array<i64: 16, 128>}]} {
    %c0 = arith.constant 0 : index
    %c0_0 = arith.constant 0 : index
    %0 = vector.load %arg1[%c0, %c0_0] : memref<16x128xf32, #tpu.memory_space<vmem>>, vector<16x128xf32>
    %c0_1 = arith.constant 0 : index
    %c0_2 = arith.constant 0 : index
    %1 = vector.load %arg2[%c0_1, %c0_2] : memref<128x256xf32, #tpu.memory_space<vmem>>, vector<128x256xf32>
    %cst = arith.constant dense<0.000000e+00> : vector<16x256xf32>
    %2 = tpu.matmul %0, %1, %cst {dimension_numbers = #tpu.dot_dimension_numbers<[1], [0], [0], [1], [0, 0, 1, 1], [], []>} : vector<16x128xf32>, vector<128x256xf32>, vector<16x256xf32> -> vector<16x256xf32>
    %c0_3 = arith.constant 0 : index
    %c0_4 = arith.constant 0 : index
    %3 = vector.load %arg3[%c0_3, %c0_4] : memref<1x256xf32, #tpu.memory_space<vmem>>, vector<1x256xf32>
    %4 = vector.broadcast %3 : vector<1x256xf32> to vector<16x256xf32>
    %5 = arith.addf %2, %4 : vector<16x256xf32>
    %cst_5 = arith.constant 5.000000e-01 : f32
    %6 = vector.broadcast %cst_5 : f32 to vector<16x256xf32>
    %7 = arith.mulf %5, %6 : vector<16x256xf32>
    %cst_6 = arith.constant 0.707106769 : f32
    %8 = vector.broadcast %cst_6 : f32 to vector<16x256xf32>
    %9 = arith.mulf %5, %8 : vector<16x256xf32>
    %10 = math.erf %9 : vector<16x256xf32>
    %cst_7 = arith.constant 1.000000e+00 : f32
    %11 = vector.broadcast %cst_7 : f32 to vector<16x256xf32>
    %12 = arith.addf %11, %10 : vector<16x256xf32>
    %13 = arith.mulf %7, %12 : vector<16x256xf32>
    %c0_8 = arith.constant 0 : index
    %c0_9 = arith.constant 0 : index
    %14 = vector.load %arg4[%c0_8, %c0_9] : memref<256x128xf32, #tpu.memory_space<vmem>>, vector<256x128xf32>
    %cst_10 = arith.constant dense<0.000000e+00> : vector<16x128xf32>
    %15 = tpu.matmul %13, %14, %cst_10 {dimension_numbers = #tpu.dot_dimension_numbers<[1], [0], [0], [1], [0, 0, 1, 1], [], []>} : vector<16x256xf32>, vector<256x128xf32>, vector<16x128xf32> -> vector<16x128xf32>
    %c0_11 = arith.constant 0 : index
    %c0_12 = arith.constant 0 : index
    %16 = vector.load %arg5[%c0_11, %c0_12] : memref<1x128xf32, #tpu.memory_space<vmem>>, vector<1x128xf32>
    %17 = vector.broadcast %16 : vector<1x128xf32> to vector<16x128xf32>
    %18 = arith.addf %15, %17 : vector<16x128xf32>
    %19 = arith.addf %18, %0 : vector<16x128xf32>
    %cst_13 = arith.constant dense<0.000000e+00> : vector<16xf32>
    %20 = vector.multi_reduction <add>, %19, %cst_13 [1] : vector<16x128xf32> to vector<16xf32>
    %21 = vector.shape_cast %20 : vector<16xf32> to vector<16x1xf32>
    %cst_14 = arith.constant 1.562500e-02 : f32
    %22 = vector.broadcast %cst_14 : f32 to vector<16x1xf32>
    %23 = arith.mulf %21, %22 : vector<16x1xf32>
    %24 = arith.mulf %19, %19 : vector<16x128xf32>
    %cst_15 = arith.constant dense<0.000000e+00> : vector<16xf32>
    %25 = vector.multi_reduction <add>, %24, %cst_15 [1] : vector<16x128xf32> to vector<16xf32>
    %26 = vector.shape_cast %25 : vector<16xf32> to vector<16x1xf32>
    %cst_16 = arith.constant 1.562500e-02 : f32
    %27 = vector.broadcast %cst_16 : f32 to vector<16x1xf32>
    %28 = arith.mulf %26, %27 : vector<16x1xf32>
    %29 = arith.mulf %23, %23 : vector<16x1xf32>
    %30 = arith.subf %28, %29 : vector<16x1xf32>
    %cst_17 = arith.constant 0.000000e+00 : f32
    %31 = vector.broadcast %cst_17 : f32 to vector<16x1xf32>
    %32 = arith.maximumf %30, %31 : vector<16x1xf32>
    %33 = vector.broadcast %23 : vector<16x1xf32> to vector<16x128xf32>
    %34 = arith.subf %19, %33 : vector<16x128xf32>
    %cst_18 = arith.constant 9.99999996E-13 : f32
    %35 = vector.broadcast %cst_18 : f32 to vector<16x1xf32>
    %36 = arith.addf %32, %35 : vector<16x1xf32>
    %37 = math.rsqrt %36 : vector<16x1xf32>
    %38 = vector.broadcast %37 : vector<16x1xf32> to vector<16x128xf32>
    %39 = arith.mulf %34, %38 : vector<16x128xf32>
    %c0_19 = arith.constant 0 : index
    %c0_20 = arith.constant 0 : index
    %40 = vector.load %arg6[%c0_19, %c0_20] : memref<1x128xf32, #tpu.memory_space<vmem>>, vector<1x128xf32>
    %41 = vector.broadcast %40 : vector<1x128xf32> to vector<16x128xf32>
    %42 = arith.mulf %41, %39 : vector<16x128xf32>
    %c0_21 = arith.constant 0 : index
    %c0_22 = arith.constant 0 : index
    %43 = vector.load %arg7[%c0_21, %c0_22] : memref<1x128xf32, #tpu.memory_space<vmem>>, vector<1x128xf32>
    %44 = vector.broadcast %43 : vector<1x128xf32> to vector<16x128xf32>
    %45 = arith.addf %42, %44 : vector<16x128xf32>
    %c0_23 = arith.constant 0 : index
    %c0_24 = arith.constant 0 : index
    %46 = vector.load %arg8[%c0_23, %c0_24] : memref<16x128xf32, #tpu.memory_space<vmem>>, vector<16x128xf32>
    tpu.vector_store %arg8[%c0_23, %c0_24], %45 {strides = array<i32>} : memref<16x128xf32, #tpu.memory_space<vmem>>, vector<16x128xf32>,
    return
  }
  func.func @transform_0(%arg0: i32) -> (i32, i32) {
    %c0_i32 = arith.constant 0 : i32
    %c0_i32_0 = arith.constant 0 : i32
    return %arg0, %c0_i32 : i32, i32
  }
  func.func @transform_1(%arg0: i32) -> (i32, i32) {
    %c0_i32 = arith.constant 0 : i32
    %c0_i32_0 = arith.constant 0 : i32
    %c0_i32_1 = arith.constant 0 : i32
    return %c0_i32, %c0_i32_0 : i32, i32
  }
  func.func @transform_2(%arg0: i32) -> (i32, i32) {
    %c0_i32 = arith.constant 0 : i32
    %c0_i32_0 = arith.constant 0 : i32
    %c0_i32_1 = arith.constant 0 : i32
    return %c0_i32, %c0_i32_0 : i32, i32
  }
  func.func @transform_3(%arg0: i32) -> (i32, i32) {
    %c0_i32 = arith.constant 0 : i32
    %c0_i32_0 = arith.constant 0 : i32
    %c0_i32_1 = arith.constant 0 : i32
    return %c0_i32, %c0_i32_0 : i32, i32
  }
  func.func @transform_4(%arg0: i32) -> (i32, i32) {
    %c0_i32 = arith.constant 0 : i32
    %c0_i32_0 = arith.constant 0 : i32
    %c0_i32_1 = arith.constant 0 : i32
    return %c0_i32, %c0_i32_0 : i32, i32
  }
  func.func @transform_5(%arg0: i32) -> (i32, i32) {
    %c0_i32 = arith.constant 0 : i32
    %c0_i32_0 = arith.constant 0 : i32
    %c0_i32_1 = arith.constant 0 : i32
    return %c0_i32, %c0_i32_0 : i32, i32
  }
  func.func @transform_6(%arg0: i32) -> (i32, i32) {
    %c0_i32 = arith.constant 0 : i32
    %c0_i32_0 = arith.constant 0 : i32
    %c0_i32_1 = arith.constant 0 : i32
    return %c0_i32, %c0_i32_0 : i32, i32
  }
  func.func @transform_7(%arg0: i32) -> (i32, i32) {
    %c0_i32 = arith.constant 0 : i32
    %c0_i32_0 = arith.constant 0 : i32
    return %arg0, %c0_i32 : i32, i32
  }
}

</mosaic_0001>

<bundles_post_ra>
// kernel: tpu_custom_call.1
= control target key start
LH: loop header
LB: loop body
LE: loop exit
PB: predicated region body
PF: predicated region fallthrough
CT: control target
= control target key end

     0   :  { %12 = vsyncpa [#allocation3], 0  ;;  %s633_s0 = inlined_call_operand.hbm [shape: f32[16,128], index: 0, kind: input, shape index: {}]   ;;  %s634_s1 = inlined_call_operand.hbm [shape: f32[128,256], index: 1, kind: input, shape index: {}]   ;;  %s635_s2 = inlined_call_operand.vmem [shape: f32[1,256], index: 2, kind: input, shape index: {}]   ;;  %s636_s3 = inlined_call_operand.hbm [shape: f32[256,128], index: 3, kind: input, shape index: {}]   ;;  %s637_s4 = inlined_call_operand.vmem [shape: f32[1,128], index: 4, kind: input, shape index: {}]   ;;  %s638_s5 = inlined_call_operand.vmem [shape: f32[1,128], index: 5, kind: input, shape index: {}]   ;;  %s639_s6 = inlined_call_operand.vmem [shape: f32[1,128], index: 6, kind: input, shape index: {}]   ;;  %s640_s7 = inlined_call_operand.hbm [shape: f32[16,128], index: 7, kind: output, shape index: {}]  }
   0x1   :  { %13 = vsyncpa [#allocation6], 0 }
   0x2   :  { %14 = vsyncpa [#allocation4], 0  ;;  %s541_s24 = smov [#allocation5]  }
   0x3   :  { %s32_s25 = sshll.u32 %s541_s24, 4  ;;  %s33_s25 = int_to_ptr.vmem [resolvable:$true] %s32_s25 }
   0x4   :  { %s463_s26 = scalar_lea.vmem %s33_s25, 4096  ;;  %p468_p1 = scmp.lt.s32.totalorder %s33_s25, %s33_s25 }
   0x5   :  { %p464_p0 = scmp.ne.s32.totalorder %s33_s25, %s463_s26  ;;  %p469_p2 = scmp.lt.s32.totalorder %s463_s26, %s463_s26 }
   0x7   :  { %p470_p3 = por %p469_p2, %p468_p1 }
   0x9   :  { %p471_p4 = pnand %p470_p3, %p464_p0 }
   0xb   :  { %474 = shalt.err (!%p471_p4)
}
   0xc   :  { %s542_s27 = smov 256   ;;  %s543_s28 = smov 16  }
   0xd   :  { %38 = dma.hbm_to_vmem [thread:$0]  %s634_s1, 4096, %s33_s25, [#allocation6], %s542_s27, %s542_s27, %s543_s28  }
   0xe   :  { %s544_s8 = smov [#allocation2]  }
   0xf   :  { %s20_s9 = sshll.u32 %s544_s8, 4  ;;  %s21_s9 = int_to_ptr.vmem [resolvable:$true] %s20_s9 }
  0x10   :  { %s483_s10 = scalar_lea.vmem %s21_s9, 256  ;;  %p488_p6 = scmp.lt.s32.totalorder %s21_s9, %s21_s9 }
  0x11   :  { %p484_p5 = scmp.ne.s32.totalorder %s21_s9, %s483_s10  ;;  %p489_p7 = scmp.lt.s32.totalorder %s483_s10, %s483_s10 }
  0x13   :  { %p490_p8 = por %p489_p7, %p488_p6 }
  0x15   :  { %p491_p9 = pnand %p490_p8, %p484_p5 }
  0x17   :  { %494 = shalt.err (!%p491_p9)
}
  0x18   :  { %s545_s11 = smov 128   ;;  %s546_s12 = smov 8  }
  0x19   :  { %26 = dma.hbm_to_vmem [thread:$0]  %s633_s0, 256, %s21_s9, [#allocation3], %s545_s11, %s545_s11, %s546_s12  }
  0x1a   :  { %s547_s1 = smov [#allocation7]  }
  0x1b   :  { %s46_s15 = sshll.u32 %s547_s1, 4  ;;  %s47_s15 = int_to_ptr.vmem [resolvable:$true] %s46_s15 }
  0x1c   :  { %s503_s16 = scalar_lea.vmem %s47_s15, 4096  ;;  %p508_p11 = scmp.lt.s32.totalorder %s47_s15, %s47_s15 }
  0x1d   :  { %p504_p10 = scmp.ne.s32.totalorder %s47_s15, %s503_s16  ;;  %p509_p12 = scmp.lt.s32.totalorder %s503_s16, %s503_s16 }
  0x1f   :  { %p510_p13 = por %p509_p12, %p508_p11 }
  0x21   :  { %p511_p0 = pnand %p510_p13, %p504_p10 }
  0x23   :  { %514 = shalt.err (!%p511_p0)
}
  0x24   :  { %52 = dma.hbm_to_vmem [thread:$0]  %s636_s3, 4096, %s47_s15, [#allocation6], %s545_s11, %s545_s11, %s546_s12  }
  0x25   :  { %535 = dma.done.wait [#allocation3], 256  }
  0x26   :  { %536 = vsyncadd [#allocation3], 4294967040 }
  0x27   :  { %537 = dma.done.wait [#allocation6], 8192  }
  0x28   :  { %538 = vsyncadd [#allocation6], 4294959104  ;;  %v548_v0 = vmov 0.0   ;;  %v101_v1 = vld [vmem:[#allocation5 + $0xf8] sm:$0xff]  ;;  %v100_v2 = vld [vmem:[#allocation5 + $0xf0] sm:$0xff]  ;;  %s549_s23 = smov [#allocation8]  }
  0x29   :  { %178 = vmatprep.mubr.f32.mxu0 %v548_v0  ;;  %v99_v3 = vld [vmem:[#allocation5 + $0xe8] sm:$0xff]  ;;  %114 = vmatprep.subr.mxu0 %v101_v1  ;;  %v98_v4 = vld [vmem:[#allocation5 + $0xe0] sm:$0xff]  ;;  %v97_v5 = vld [vmem:[#allocation5 + $0xd8] sm:$0xff]  ;;  %s380_s24 = sshll.u32 %s549_s23, 4  ;;  %s381_s24 = int_to_ptr.vmem [resolvable:$true] %s380_s24 }
  0x2a   :  { %115 = vmatpush1.msra.mxu0 %v100_v2  ;;  %v96_v6 = vld [vmem:[#allocation5 + $0xd0] sm:$0xff]  ;;  %v95_v7 = vld [vmem:[#allocation5 + $0xc8] sm:$0xff]  ;;  %v94_v8 = vld [vmem:[#allocation5 + $0xc0] sm:$0xff]  ;;  %s515_s25 = scalar_lea.vmem %s381_s24, 256  ;;  %p520_p2 = scmp.lt.s32.totalorder %s381_s24, %s381_s24 }
  0x2b   :  { %116 = vmatprep.subr.mxu0 %v99_v3  ;;  %v93_v9 = vld [vmem:[#allocation5 + $0xb8] sm:$0xff]  ;;  %v92_v10 = vld [vmem:[#allocation5 + $0xb0] sm:$0xff]  ;;  %v91_v11 = vld [vmem:[#allocation5 + $0xa8] sm:$0xff]  ;;  %v104_v3 = vlaneseq  ;;  %p516_p1 = scmp.ne.s32.totalorder %s381_s24, %s515_s25  ;;  %p521_p3 = scmp.lt.s32.totalorder %s515_s25, %s515_s25 }
  0x2c   :  { %117 = vmatpush1.msra.mxu0 %v98_v4  ;;  %v90_v12 = vld [vmem:[#allocation5 + $0xa0] sm:$0xff]  ;;  %v89_v13 = vld [vmem:[#allocation5 + $0x98] sm:$0xff]  ;;  %v88_v14 = vld [vmem:[#allocation5 + $0x90] sm:$0xff] }
  0x2d   :  { %118 = vmatprep.subr.mxu0 %v97_v5  ;;  %v242_v15 = vld [vmem:[#allocation7 + $0xf8] sm:$0xff]  ;;  %v87_v17 = vld [vmem:[#allocation5 + $0x88] sm:$0xff]  ;;  %v241_v18 = vld [vmem:[#allocation7 + $0xf0] sm:$0xff]  ;;  %v105_v4 = vshrl.u32 %v104_v3, 7  ;;  %p522_p4 = por %p521_p3, %p520_p2 }
  0x2e   :  { %119 = vmatpush1.msra.mxu0 %v96_v6  ;;  %v226_v16 = vld [vmem:[#allocation7 + $0x78] sm:$0xff]  ;;  %396 = vmatprep.subr.mxu1 %v242_v15  ;;  %v225_v19 = vld [vmem:[#allocation7 + $0x70] sm:$0xff]  ;;  %v86_v20 = vld [vmem:[#allocation5 + $0x80] sm:$0xff] }
  0x2f   :  { %120 = vmatprep.subr.mxu0 %v95_v7  ;;  %397 = vmatpush3.msra.mxu1 %v226_v16  ;;  %v240_v21 = vld [vmem:[#allocation7 + $0xe8] sm:$0xff]  ;;  %v85_v22 = vld [vmem:[#allocation5 + $0x78] sm:$0xff]  ;;  %v84_v24 = vld [vmem:[#allocation5 + $0x70] sm:$0xff]  ;;  %v106_v5 = vsub.s32 0, %v105_v4  ;;  %v110_v7 = vsub.s32 1, %v105_v4  ;;  %p523_p5 = pnand %p522_p4, %p516_p1 }
  0x30   :  { %121 = vmatpush1.msra.mxu0 %v94_v8  ;;  %398 = vmatprep.subr.mxu1 %v241_v18  ;;  %v224_v23 = vld [vmem:[#allocation7 + $0x68] sm:$0xff]  ;;  %v82_v26 = vld [vmem:[#allocation5 + $0x60] sm:$0xff]  ;;  %v81_v27 = vld [vmem:[#allocation5 + $0x58] sm:$0xff] }
  0x31   :  { %122 = vmatprep.subr.mxu0 %v93_v9  ;;  %399 = vmatpush3.msra.mxu1 %v225_v19  ;;  %v83_v25 = vld [vmem:[#allocation5 + $0x68] sm:$0xff]  ;;  %v80_v28 = vld [vmem:[#allocation5 + $0x50] sm:$0xff]  ;;  %v78_v30 = vld [vmem:[#allocation5 + $0x40] sm:$0xff] }
  0x32   :  { %123 = vmatpush1.msra.mxu0 %v92_v10  ;;  %400 = vmatprep.subr.mxu1 %v240_v21  ;;  %v79_v29 = vld [vmem:[#allocation5 + $0x48] sm:$0xff]  ;;  %v77_v31 = vld [vmem:[#allocation5 + $0x38] sm:$0xff]  ;;  %v76_v32 = vld [vmem:[#allocation5 + $0x30] sm:$0xff] }
  0x33   :  { %124 = vmatprep.subr.mxu0 %v91_v11  ;;  %401 = vmatpush3.msra.mxu1 %v224_v23  ;;  %v75_v33 = vld [vmem:[#allocation5 + $0x28] sm:$0xff]  ;;  %v74_v34 = vld [vmem:[#allocation5 + $0x20] sm:$0xff]  ;;  %v73_v35 = vld [vmem:[#allocation5 + $0x18] sm:$0xff] }
  0x34   :  { %125 = vmatpush1.msra.mxu0 %v90_v12  ;;  %v72_v36 = vld [vmem:[#allocation5 + $0x10] sm:$0xff]  ;;  %v71_v37 = vld [vmem:[#allocation5 + $0x8] sm:$0xff]  ;;  %v70_v38 = vld [vmem:[#allocation5] sm:$0xff] }
  0x35   :  { %126 = vmatprep.subr.mxu0 %v89_v13  ;;  %v606_v39 = vld [vmem:[#allocation2] sm:$0xff]  ;;  %v610_v40 = vld [vmem:[#allocation2 + $0x8] sm:$0xff]  ;;  %v239_v41 = vld [vmem:[#allocation7 + $0xe0] sm:$0xff] }
  0x36   :  { %127 = vmatpush1.msra.mxu0 %v88_v14  ;;  %402 = vmatprep.subr.mxu1 %v239_v41  ;;  %v223_v42 = vld [vmem:[#allocation7 + $0x60] sm:$0xff]  ;;  %v238_v43 = vld [vmem:[#allocation7 + $0xd8] sm:$0xff]  ;;  %v237_v45 = vld [vmem:[#allocation7 + $0xd0] sm:$0xff] }
  0x37   :  { %128 = vmatprep.subr.mxu0 %v87_v17  ;;  %403 = vmatpush3.msra.mxu1 %v223_v42  ;;  %v222_v44 = vld [vmem:[#allocation7 + $0x58] sm:$0xff]  ;;  %v221_v46 = vld [vmem:[#allocation7 + $0x50] sm:$0xff]  ;;  %v236_v47 = vld [vmem:[#allocation7 + $0xc8] sm:$0xff] }
  0x38   :  { %129 = vmatpush1.msra.mxu0 %v86_v20  ;;  %404 = vmatprep.subr.mxu1 %v238_v43  ;;  %v220_v48 = vld [vmem:[#allocation7 + $0x48] sm:$0xff]  ;;  %v235_v49 = vld [vmem:[#allocation7 + $0xc0] sm:$0xff]  ;;  %v234_v51 = vld [vmem:[#allocation7 + $0xb8] sm:$0xff] }
  0x39   :  { %130 = vmatprep.subr.mxu0 %v85_v22  ;;  %405 = vmatpush3.msra.mxu1 %v222_v44  ;;  %v219_v50 = vld [vmem:[#allocation7 + $0x40] sm:$0xff]  ;;  %v218_v52 = vld [vmem:[#allocation7 + $0x38] sm:$0xff]  ;;  %v233_v53 = vld [vmem:[#allocation7 + $0xb0] sm:$0xff] }
  0x3a   :  { %131 = vmatpush1.msra.mxu0 %v84_v24  ;;  %406 = vmatprep.subr.mxu1 %v237_v45  ;;  %v217_v54 = vld [vmem:[#allocation7 + $0x30] sm:$0xff]  ;;  %v232_v55 = vld [vmem:[#allocation7 + $0xa8] sm:$0xff]  ;;  %v231_v57 = vld [vmem:[#allocation7 + $0xa0] sm:$0xff] }
  0x3b   :  { %132 = vmatprep.subr.mxu0 %v83_v25  ;;  %407 = vmatpush3.msra.mxu1 %v221_v46  ;;  %v216_v56 = vld [vmem:[#allocation7 + $0x28] sm:$0xff]  ;;  %v215_v58 = vld [vmem:[#allocation7 + $0x20] sm:$0xff]  ;;  %v230_v59 = vld [vmem:[#allocation7 + $0x98] sm:$0xff] }
  0x3c   :  { %133 = vmatpush1.msra.mxu0 %v82_v26  ;;  %408 = vmatprep.subr.mxu1 %v236_v47  ;;  %v214_v60 = vld [vmem:[#allocation7 + $0x18] sm:$0xff]  ;;  %v229_v61 = vld [vmem:[#allocation7 + $0x90] sm:$0xff]  ;;  %v228_v63 = vld [vmem:[#allocation7 + $0x88] sm:$0xff] }
  0x3d   :  { %134 = vmatprep.subr.mxu0 %v81_v27  ;;  %409 = vmatpush3.msra.mxu1 %v220_v48  ;;  %v213_v62 = vld [vmem:[#allocation7 + $0x10] sm:$0xff]  ;;  %v227_v1 = vld [vmem:[#allocation7 + $0x80] sm:$0xff] }
  0x3e   :  { %135 = vmatpush1.msra.mxu0 %v80_v28  ;;  %410 = vmatprep.subr.mxu1 %v235_v49  ;;  %v211_v2 = vld [vmem:[#allocation7] sm:$0xff]  ;;  %v102_v6 = vld [vmem:[%s635_s2] sm:$0x3] }
  0x3f   :  { %136 = vmatprep.subr.mxu0 %v79_v29  ;;  %411 = vmatpush3.msra.mxu1 %v219_v50  ;;  %v107_v8 = vrot.slane %v102_v6, %v106_v5  ;;  %v111_v9 = vrot.slane %v102_v6, %v110_v7  ;;  %v393_v41 = vld [vmem:[%s637_s4] ss:$0 sm:$0xff] }
  0x40   :  { %137 = vmatpush1.msra.mxu0 %v78_v30  ;;  %412 = vmatprep.subr.mxu1 %v234_v51  ;;  %v394_v5 = vld [vmem:[%s638_s5] ss:$0 sm:$0xff] }
  0x41   :  { %138 = vmatprep.subr.mxu0 %v77_v31  ;;  %413 = vmatpush3.msra.mxu1 %v218_v52  ;;  %v395_v7 = vld [vmem:[%s639_s6] ss:$0 sm:$0xff] }
  0x42   :  { %139 = vmatpush1.msra.mxu0 %v76_v32  ;;  %414 = vmatprep.subr.mxu1 %v233_v53 }
  0x43   :  { %140 = vmatprep.subr.mxu0 %v75_v33  ;;  %415 = vmatpush3.msra.mxu1 %v217_v54 }
  0x44   :  { %141 = vmatpush1.msra.mxu0 %v74_v34  ;;  %416 = vmatprep.subr.mxu1 %v232_v55 }
  0x45   :  { %142 = vmatprep.subr.mxu0 %v73_v35  ;;  %417 = vmatpush3.msra.mxu1 %v216_v56 }
  0x46   :  { %143 = vmatpush1.msra.mxu0 %v72_v36  ;;  %418 = vmatprep.subr.mxu1 %v231_v57 }
  0x47   :  { %144 = vmatprep.subr.mxu0 %v71_v37  ;;  %419 = vmatpush3.msra.mxu1 %v215_v58 }
  0x48   :  { %145 = vmatpush1.msra.mxu0 %v70_v38  ;;  %420 = vmatprep.subr.mxu1 %v230_v59 }
  0x49   :  { %179 = vmatmul.mubr.f32.vlgmr.msra.gmra.mxu0 %v606_v39  ;;  %421 = vmatpush3.msra.mxu1 %v214_v60 }
  0x4a   :  { %184 = vmatprep.mubr.f32.mxu0 %v548_v0  ;;  %422 = vmatprep.subr.mxu1 %v229_v61  ;;  %v212_v0 = vld [vmem:[#allocation7 + $0x8] sm:$0xff] }
  0x4b   :  { %423 = vmatpush3.msra.mxu1 %v213_v62 }
  0x4c   :  { %424 = vmatprep.subr.mxu1 %v228_v63 }
  0x4d   :  { %185 = vmatmul.mubr.f32.gmra.mxu0 %v610_v40  ;;  %425 = vmatpush3.msra.mxu1 %v212_v0 }
  0x4e   :  { %426 = vmatprep.subr.mxu1 %v227_v1 }
  0x4f   :  { %427 = vmatpush3.msra.mxu1 %v211_v2 }
 0x109   :  { %v180_v10 = vpop.f32.mrf.mxu0 }
 0x10a   :  { %v181_v11 = vadd.f32 %v180_v10, %v107_v8 }
 0x10b   :  { %v182_v12 = vpop.f32.mrf.mxu0 }
 0x10c   :  { %v195_v13 = vmul.f32 0.70710677, %v181_v11  ;;  %v183_v14 = vadd.f32 %v182_v12, %v111_v9  ;;  %v191_v28 = vmul.f32 0.5, %v181_v11 }
 0x10d   :  { %v186_v15 = vpop.f32.mrf.mxu0 }
 0x10e   :  { %443 = verf.f32 %v195_v13  ;;  %v196_v16 = vmul.f32 0.70710677, %v183_v14  ;;  %v187_v17 = vadd.f32 %v186_v15, %v107_v8  ;;  %v192_v25 = vmul.f32 0.5, %v183_v14 }
 0x10f   :  { %v188_v18 = vpop.f32.mrf.mxu0 }
 0x110   :  { %445 = verf.f32 %v196_v16  ;;  %v197_v19 = vmul.f32 0.70710677, %v187_v17  ;;  %v189_v20 = vadd.f32 %v188_v18, %v111_v9  ;;  %v193_v35 = vmul.f32 0.5, %v187_v17 }
 0x112   :  { %447 = verf.f32 %v197_v19  ;;  %v198_v21 = vmul.f32 0.70710677, %v189_v20  ;;  %v194_v33 = vmul.f32 0.5, %v189_v20 }
 0x114   :  { %449 = verf.f32 %v198_v21 }
 0x11b   :  { %v444_v22 = vpop.eup %443 }
 0x11c   :  { %v203_v24 = vadd.f32 1.0, %v444_v22 }
 0x11d   :  { %v446_v23 = vpop.eup %445 }
 0x11e   :  { %v204_v26 = vadd.f32 1.0, %v446_v23  ;;  %v207_v31 = vmul.f32 %v203_v24, %v191_v28 }
 0x11f   :  { %v448_v27 = vpop.eup %447 }
 0x120   :  { %v208_v29 = vmul.f32 %v204_v26, %v192_v25  ;;  %v205_v32 = vadd.f32 1.0, %v448_v27 }
 0x121   :  { %v450_v30 = vpop.eup %449 }
 0x122   :  { %314 = vmatprep.mubr.f32.mxu1 %v208_v29  ;;  %v206_v34 = vadd.f32 1.0, %v450_v30  ;;  %v209_v37 = vmul.f32 %v205_v32, %v193_v35 }
 0x123   :  { %315 = vmatmul.mubr.f32.vlgmr.msra.gmra.mxu1 %v207_v31 }
 0x124   :  { %v210_v36 = vmul.f32 %v206_v34, %v194_v33 }
 0x126   :  { %319 = vmatprep.mubr.f32.mxu1 %v210_v36 }
 0x127   :  { %320 = vmatmul.mubr.f32.gmra.mxu1 %v209_v37 }
 0x1e3   :  { %v428_v38 = vpop.f32.mrf.mxu1 }
 0x1e5   :  { %v429_v42 = vpop.f32.mrf.mxu1 }
 0x1e6   :  { %v430_v43 = vadd.f32 %v429_v42, %v428_v38 }
 0x1e7   :  { %v431_v44 = vpop.f32.mrf.mxu1 }
 0x1e8   :  { %v317_v45 = vadd.f32 %v430_v43, %v393_v41 }
 0x1e9   :  { %v432_v46 = vpop.f32.mrf.mxu1 }
 0x1ea   :  { %v433_v47 = vadd.f32 %v432_v46, %v431_v44  ;;  %v325_v48 = vadd.f32 %v317_v45, %v606_v39 }
 0x1ec   :  { %v322_v49 = vadd.f32 %v433_v47, %v393_v41  ;;  %327 = vadd.xlane.f32.xlu0 %v325_v48  ;;  %v333_v50 = vmul.f32 %v325_v48, %v325_v48 }
 0x1ee   :  { %335 = vadd.xlane.f32.xlu1 %v333_v50  ;;  %v326_v51 = vadd.f32 %v322_v49, %v610_v40 }
 0x1f0   :  { %329 = vadd.xlane.f32.xlu0 %v326_v51  ;;  %v334_v52 = vmul.f32 %v326_v51, %v326_v51 }
 0x1f2   :  { %337 = vadd.xlane.f32.xlu1 %v334_v52 }
 0x275   :  { %v328_v53 = vpop.xlane.xlu0 %327 }
 0x276   :  { %v331_v54 = vmul.f32 0.015625, %v328_v53 }
 0x277   :  { %v336_v55 = vpop.xlane.xlu1 %335 }
 0x278   :  { %v341_v56 = vmul.f32 %v331_v54, %v331_v54  ;;  %v339_v57 = vmul.f32 0.015625, %v336_v55  ;;  %v347_v3 = vsub.f32 %v325_v48, %v331_v54 }
 0x279   :  { %v330_v58 = vpop.xlane.xlu0 %329 }
 0x27a   :  { %v343_v59 = vsub.f32 %v339_v57, %v341_v56  ;;  %v332_v60 = vmul.f32 0.015625, %v330_v58 }
 0x27b   :  { %v338_v61 = vpop.xlane.xlu1 %337 }
 0x27c   :  { %v345_v62 = vmax.f32 %v343_v59, 0.0  ;;  %v342_v39 = vmul.f32 %v332_v60, %v332_v60  ;;  %v340_v63 = vmul.f32 0.015625, %v338_v61  ;;  %v348_v8 = vsub.f32 %v326_v51, %v332_v60 }
 0x27e   :  { %v349_v0 = vadd.f32 1e-12, %v345_v62  ;;  %v344_v1 = vsub.f32 %v340_v63, %v342_v39 }
 0x280   :  { %451 = vrsqrt.f32 %v349_v0  ;;  %v346_v2 = vmax.f32 %v344_v1, 0.0 }
 0x282   :  { %v350_v40 = vadd.f32 1e-12, %v346_v2 }
 0x284   :  { %453 = vrsqrt.f32 %v350_v40 }
 0x28d   :  { %v452_v4 = vpop.eup %451 }
 0x28e   :  { %v353_v6 = vmul.f32 %v452_v4, %v347_v3 }
 0x290   :  { %v362_v9 = vmul.f32 %v394_v5, %v353_v6 }
 0x291   :  { %v454_v10 = vpop.eup %453 }
 0x292   :  { %v354_v11 = vmul.f32 %v454_v10, %v348_v8  ;;  %v371_v12 = vadd.f32 %v395_v7, %v362_v9 }
 0x294   :  { %v363_v13 = vmul.f32 %v394_v5, %v354_v11  ;;  %373 = vst [vmem:[#allocation8] sm:$0xff] %v371_v12 }
 0x296   :  { %v372_v14 = vadd.f32 %v395_v7, %v363_v13 }
 0x298   :  { %374 = vst [vmem:[#allocation8 + $0x8] sm:$0xff] %v372_v14 }
 0x299   :  { %526 = shalt.err (!%p523_p5)
}
 0x29a   :  { %386 = dma.vmem_to_hbm [thread:$0]  %s381_s24, 256, %s640_s7, [#allocation4], %s545_s11, %s545_s11, %s546_s12  }
 0x29b   :  { %539 = dma.done.wait [#allocation4], 256  }
 0x29c   :  { %540 = vsyncadd [#allocation4], 4294967040 }
 0x29d   :  { %390 = vsyncpa [#allocation3], 1 }
 0x29e   :  { %391 = vsyncpa [#allocation6], 1 }
 0x29f   :  { %392 = vsyncpa [#allocation4], 1 }

</bundles_post_ra>
